<compile_context>
chip_gen: v7x
topology: tpu7x:2x2x1
jax: 0.10.0
libtpu: 0.0.40
codegen_flags: <defaults>
</compile_context>

<pallas_src>
import jax
import jax.numpy as jnp
from jax.experimental import pallas as pl
from jax.experimental.pallas import tpu as pltpu


def _conv_relu_kernel(p_ref, w_ref, b_ref, o_ref):
    # p_ref: (1, K, M)   w_ref: (C_out, K)   b_ref: (C_out, 1)   o_ref: (1, C_out, M)
    patches = p_ref[0]                                     # (K, M)
    acc = jax.lax.dot_general(                             # one MXU matmul, K=36
        w_ref[...], patches,
        dimension_numbers=(((1,), (0,)), ((), ())),
        preferred_element_type=jnp.float32,
    )                                                      # (C_out, M), lane-dense
    acc = acc + b_ref[...]                                 # (C_out, 1) broadcasts over lanes
    o_ref[0] = jnp.maximum(acc, 0.0).astype(o_ref.dtype)   # fused ReLU, lane-dense store


def conv_layer_forward(x_nchw, weight, bias):
    """x_nchw: (N, C_in, H, W); weight: (C_out, C_in, KH, KW); bias: (C_out,)."""
    N, C_in, H, W = x_nchw.shape
    C_out, _, KH, KW = weight.shape
    H_out = H - KH + 1
    W_out = W - KW + 1
    M = H_out * W_out
    K = KH * KW * C_in

    # im2col in the wrapper (lax slices + reshape): contraction index
    # k = (kh*KW + kw)*C_in + c_in, spatial index m = oh*W_out + ow.
    taps = [x_nchw[:, :, kh:kh + H_out, kw:kw + W_out]     # (N, C_in, H_out, W_out)
            for kh in range(KH) for kw in range(KW)]
    patches = jnp.stack(taps, axis=1).reshape(N, K, M)     # (N, K, M)

    # Same k ordering on the weight: (C_out, C_in, KH, KW) -> (C_out, KH, KW, C_in) -> (C_out, K)
    w2d = jnp.transpose(weight, (0, 2, 3, 1)).reshape(C_out, K)
    b2d = bias.reshape(C_out, 1)

    out = pl.pallas_call(
        _conv_relu_kernel,
        out_shape=jax.ShapeDtypeStruct((N, C_out, M), jnp.float32),
        grid_spec=pltpu.PrefetchScalarGridSpec(
            num_scalar_prefetch=0,
            grid=(N,),
            in_specs=[
                pl.BlockSpec((1, K, M), lambda n: (n, 0, 0)),
                pl.BlockSpec((C_out, K), lambda n: (0, 0)),
                pl.BlockSpec((C_out, 1), lambda n: (0, 0)),
            ],
            out_specs=pl.BlockSpec((1, C_out, M), lambda n: (n, 0, 0)),
        ),
        compiler_params=pltpu.CompilerParams(
            dimension_semantics=("parallel",)),   # v7x: one sample per TensorCore
    )(patches, w2d, b2d)

    # Output is already NCHW-flattened: free reshape, no transpose.
    return out.reshape(N, C_out, H_out, W_out)


if __name__ == "__main__":
    # Shapes consistent with ConvLayer(in_channel=4, out_channel=8, kernel_size=3).
    N, C_in, H, W = 2, 4, 16, 16
    C_out, KH, KW = 8, 3, 3

    key = jax.random.PRNGKey(0)
    kx, kw_key, kb = jax.random.split(key, 3)
    x = jax.random.normal(kx, (N, C_in, H, W), dtype=jnp.float32)
    weight = jax.random.normal(kw_key, (C_out, C_in, KH, KW), dtype=jnp.float32) * 0.1
    bias = jax.random.normal(kb, (C_out,), dtype=jnp.float32) * 0.1

    out = jax.block_until_ready(conv_layer_forward(x, weight, bias))

    # Reference check against XLA's conv (same NCHW semantics as PyTorch).
    ref = jax.lax.conv_general_dilated(
        x, weight, window_strides=(1, 1), padding="VALID",
        dimension_numbers=("NCHW", "OIHW", "NCHW"))
    ref = jnp.maximum(ref + bias[None, :, None, None], 0.0)
    assert out.shape == (N, C_out, H - KH + 1, W - KW + 1)
    assert jnp.allclose(out, ref, atol=1e-4, rtol=1e-4)

    print("KERNEL_OK")
</pallas_src>

<mosaic_0001>
module attributes {stable_mosaic.version = 11 : i64} {
  func.func @_conv_relu_kernel(%arg0: i32, %arg1: memref<1x36x196xf32, #tpu.memory_space<vmem>>, %arg2: memref<8x36xf32, #tpu.memory_space<vmem>>, %arg3: memref<8x1xf32, #tpu.memory_space<vmem>>, %arg4: memref<1x8x196xf32, #tpu.memory_space<vmem>>) attributes {dimension_semantics = [#tpu.dimension_semantics<parallel>], iteration_bounds = array<i64: 2>, scalar_prefetch = 0 : i64, scratch_operands = 0 : i64, tpu.core_type = #tpu.core_type<tc>, window_params = [{transform_indices = @transform_0, window_bounds = array<i64: 1, 36, 196>}, {pipeline_mode = #tpu.pipeline_mode<synchronous>, transform_indices = @transform_1, window_bounds = array<i64: 8, 36>}, {pipeline_mode = #tpu.pipeline_mode<synchronous>, transform_indices = @transform_2, window_bounds = array<i64: 8, 1>}, {transform_indices = @transform_3, window_bounds = array<i64: 1, 8, 196>}]} {
    %c0 = arith.constant 0 : index
    %c0_0 = arith.constant 0 : index
    %c0_1 = arith.constant 0 : index
    %0 = vector.load %arg1[%c0, %c0_0, %c0_1] : memref<1x36x196xf32, #tpu.memory_space<vmem>>, vector<1x36x196xf32>
    %1 = vector.shape_cast %0 : vector<1x36x196xf32> to vector<36x196xf32>
    %c0_2 = arith.constant 0 : index
    %c0_3 = arith.constant 0 : index
    %2 = vector.load %arg2[%c0_2, %c0_3] : memref<8x36xf32, #tpu.memory_space<vmem>>, vector<8x36xf32>
    %cst = arith.constant dense<0.000000e+00> : vector<8x196xf32>
    %3 = tpu.matmul %2, %1, %cst {dimension_numbers = #tpu.dot_dimension_numbers<[1], [0], [0], [1], [0, 0, 1, 1], [], []>} : vector<8x36xf32>, vector<36x196xf32>, vector<8x196xf32> -> vector<8x196xf32>
    %c0_4 = arith.constant 0 : index
    %c0_5 = arith.constant 0 : index
    %4 = vector.load %arg3[%c0_4, %c0_5] : memref<8x1xf32, #tpu.memory_space<vmem>>, vector<8x1xf32>
    %5 = vector.broadcast %4 : vector<8x1xf32> to vector<8x196xf32>
    %6 = arith.addf %3, %5 : vector<8x196xf32>
    %cst_6 = arith.constant 0.000000e+00 : f32
    %7 = vector.broadcast %cst_6 : f32 to vector<8x196xf32>
    %8 = arith.maximumf %6, %7 : vector<8x196xf32>
    %c0_7 = arith.constant 0 : index
    %c0_8 = arith.constant 0 : index
    %c0_9 = arith.constant 0 : index
    %9 = vector.load %arg4[%c0_7, %c0_8, %c0_9] : memref<1x8x196xf32, #tpu.memory_space<vmem>>, vector<1x8x196xf32>
    %10 = vector.shape_cast %9 : vector<1x8x196xf32> to vector<8x196xf32>
    %11 = vector.shape_cast %8 : vector<8x196xf32> to vector<1x8x196xf32>
    tpu.vector_store %arg4[%c0_7, %c0_8, %c0_9], %11 {strides = array<i32>} : memref<1x8x196xf32, #tpu.memory_space<vmem>>, vector<1x8x196xf32>,
    return
  }
  func.func @transform_0(%arg0: i32) -> (i32, i32, i32) {
    %c0_i32 = arith.constant 0 : i32
    %c0_i32_0 = arith.constant 0 : i32
    %c0_i32_1 = arith.constant 0 : i32
    return %arg0, %c0_i32, %c0_i32_0 : i32, i32, i32
  }
  func.func @transform_1(%arg0: i32) -> (i32, i32) {
    %c0_i32 = arith.constant 0 : i32
    %c0_i32_0 = arith.constant 0 : i32
    %c0_i32_1 = arith.constant 0 : i32
    return %c0_i32, %c0_i32_0 : i32, i32
  }
  func.func @transform_2(%arg0: i32) -> (i32, i32) {
    %c0_i32 = arith.constant 0 : i32
    %c0_i32_0 = arith.constant 0 : i32
    %c0_i32_1 = arith.constant 0 : i32
    return %c0_i32, %c0_i32_0 : i32, i32
  }
  func.func @transform_3(%arg0: i32) -> (i32, i32, i32) {
    %c0_i32 = arith.constant 0 : i32
    %c0_i32_0 = arith.constant 0 : i32
    %c0_i32_1 = arith.constant 0 : i32
    return %arg0, %c0_i32, %c0_i32_0 : i32, i32, i32
  }
}

</mosaic_0001>

<bundles_post_ra>
// kernel: tpu_custom_call.1
= control target key start
LH: loop header
LB: loop body
LE: loop exit
PB: predicated region body
PF: predicated region fallthrough
CT: control target
= control target key end

     0   :  { %8 = vsyncpa [#allocation3], 0  ;;  %s606_s0 = inlined_call_operand.vmem [shape: f32[2,36,196], index: 0, kind: input, shape index: {}]   ;;  %s607_s1 = inlined_call_operand.vmem [shape: f32[8,36], index: 1, kind: input, shape index: {}]   ;;  %s608_s2 = inlined_call_operand.vmem [shape: f32[8,1], index: 2, kind: input, shape index: {}]   ;;  %s609_s3 = inlined_call_operand.hbm [shape: f32[2,8,196], index: 3, kind: output, shape index: {}]  }
   0x1   :  { %10 = vsyncpa [#allocation3 + $0x1], 0  ;;  %s500_s12 = smov 0   ;;  %s502_s13 = smov 0  }
   0x2   :  { %s504_s14 = smov 0   ;;  %s506_s15 = smov 0  }
   0x3 LB: > { %s521_s16 = sadd.s32 4294967295, %s475_s15   ;;  %s347_s17 = sadd.s32 4294967294, %s475_s15   ;;  %s475_s15 = sphi %s506_s15, %s615_s15   ;;  %s471_s14 = sphi %s504_s14, %s614_s14   ;;  %s467_s13 = sphi %s502_s13, %s613_s13   ;;  %s463_s12 = sphi %s500_s12, %s612_s12  }
   0x4   : > { %s525_s18 = sadd.s32 1, %s475_s15   ;;  %s91_s19 = sadd.s32 1, %s471_s14 }
   0x5   : > { %s88_s20 = ssub.s32 %s475_s15, %s525_s18  ;;  %p101_p0 = scmp.ne.s32.totalorder %s471_s14, %s467_s13 }
   0x6   : > { %p89_p1 = scmp.eq.s32.totalorder %s88_s20, 0  ;;  %p102_p2 = scmp.eq.s32.totalorder %s521_s16, 1 }
   0x7   : > { %p107_p3 = scmp.ne.s32.totalorder %s467_s13, %s463_s12  ;;  %p108_p4 = scmp.eq.s32.totalorder %s347_s17, 1 }
   0x8   : > { %s536_s21 = scalar_select %p89_p1, %s471_s14, %s91_s19  }
   0x9   : > { %p538_p5 = por %p102_p2, %p101_p0  ;;  %p542_p6 = por %p108_p4, %p107_p3 }
   0xa   : > { %p350_p7 = scmp.ge.s32.totalorder %s475_s15, 1  ;;  %p140_p8 = scmp.lt.s32.totalorder %s475_s15, 3 }
   0xc   : > { %p141_p9 = pnand %p350_p7, %p140_p8 }
   0xd   : > { %p164_p10 = scmp.lt.s32.totalorder (!%p141_p9), %s521_s16, 1  ;;  %v477_v0 = vmov (!%p141_p9), 0.0   ;;  %v478_v1 = vmov (!%p141_p9), 0   ;;  %v180_v2 = vld [vmem:[%s608_s2] sm:$0xff] (!%p141_p9)  ;;  %vm190_vm0 = vcmask (!%p141_p9), 1043456   ;;  %vm186_vm1 = vcmask (!%p141_p9), 293888  }
   0xe   : > { %144 = sbr.rel (%p141_p9) target bundleno = 270 (0x10e), region = 32  ;;  %261 = vmatprep.mubr.f32.mxu0 (!%p141_p9), %v477_v0  ;;  %412 = vset.pattern.permute.xlu0 (!%p141_p9), %v478_v1  ;;  %v179_v17 = vld [vmem:[%s607_s1] sm:$0xff] (!%p141_p9)  ;;  %s161_s6 = sand.u32 (!%p141_p9), 1, %s467_s13   ;;  %vm271_vm2 = vcmask (!%p141_p9), 556032  }
   0xf   : > { %183 = vperm.xlu0 (!%p141_p9), %412, %v180_v2   ;;  %s351_s7 = sshll.u32 (!%p141_p9), %s161_s6, 4  ;;  %s361_s8 = sshll.u32 (!%p141_p9), %s521_s16, 8 }
  0x10   : > { %s163_s9 = scalar_lea.vmem (!%p141_p9), [#allocation2], %s351_s7  ;;  %s564_s19 = scalar_lea.hbm (!%p141_p9), %s609_s3, %s361_s8 }
  0x11   : > { %s288_s10 = sshll.u32 (!%p141_p9), %s163_s9, 4  ;;  %s274_s20 = scalar_lea.sflag (!%p141_p9), [#allocation3], %s161_s6  ;;  %s566_s10 = int_to_ptr.vmem [resolvable:$true] %s288_s10 }
  0x12   : > { %s479_s24 = smov (!%p141_p9), [#allocation2]  }
  0x13   : > { %s417_s25 = sshll.u32 (!%p141_p9), %s479_s24, 4  ;;  %s418_s25 = int_to_ptr.vmem [resolvable:$false] %s417_s25 }
  0x14   : > { %p420_p0 = scmp.lt.s32.totalorder (!%p141_p9), %s566_s10, %s418_s25 }
  0x15   : > { %s165_s26 = scalar_select %p164_p10, %s521_s16, 1 }
  0x16   : > { %s413_s16 = scalar_lea.vmem %s566_s10, 256 }
  0x17   : > { %s370_s27 = smul.u32 80, %s165_s26  ;;  %p414_p11 = scmp.ne.s32.totalorder %s566_s10, %s413_s16 }
  0x18   : > { %s419_s26 = scalar_lea.vmem %s418_s25, 512 }
  0x19   : > { %s168_s30 = scalar_lea.vmem %s606_s0, %s370_s27  ;;  %p415_p12 = pnand %p414_p11, %p538_p5 }
  0x1a   : > { %v170_v3 = vld [vmem:[%s168_s30 + $0x8] sm:$0xff]  ;;  %v172_v4 = vld [vmem:[%s168_s30 + $0x18] sm:$0xff]  ;;  %v169_v5 = vld [vmem:[%s168_s30] sm:$0xff]  ;;  %p421_p1 = scmp.lt.s32.totalorder %s419_s26, %s413_s16 }
  0x1b   : > { %v362_v6 = vpack.c.bf16 %v172_v4, %v170_v3  ;;  %v171_v7 = vld [vmem:[%s168_s30 + $0x10] sm:$0xff]  ;;  %v174_v8 = vld [vmem:[%s168_s30 + $0x28] sm:$0xff]  ;;  %v176_v9 = vld [vmem:[%s168_s30 + $0x38] sm:$0xff]  ;;  %p416_p13 = pneg %p415_p12 }
  0x1c   : > { %v364_v10 = vpack.c.bf16 %v171_v7, %v169_v5  ;;  %v366_v11 = vpack.c.bf16 %v176_v9, %v174_v8  ;;  %v173_v12 = vld [vmem:[%s168_s30 + $0x20] sm:$0xff]  ;;  %v175_v13 = vld [vmem:[%s168_s30 + $0x30] sm:$0xff]  ;;  %v178_v15 = vld [vmem:[%s168_s30 + $0x48] sm:$0xf]  ;;  %p422_p2 = por %p421_p1, %p420_p0 }
  0x1d   : > { %363 = vmatprep.subr.bf16.mxu0 %v362_v6  ;;  %v368_v14 = vpack.c.bf16 %v175_v13, %v173_v12  ;;  %v177_v16 = vld [vmem:[%s168_s30 + $0x40] sm:$0xf] }
  0x1e   : > { %365 = vmatpush1.bf16.msra.mxu0 %v364_v10  ;;  %p423_p3 = pnand %p422_p2, %p416_p13 }
  0x1f   : > { %367 = vmatprep.subr.bf16.mxu0 %v366_v11 }
  0x22   : > { %369 = vmatpush1.bf16.msra.mxu0 %v368_v14 }
  0x23   : > { %353 = vmatprep.subr.msk.mxu0 %vm190_vm0, %v178_v15 }
  0x26   : > { %354 = vmatpush1.msk.msra.mxu0 %vm190_vm0, %v177_v16 }
  0x27   : > { %355 = vmatmul.mubr.msk.f32.vlgmr.msra.gmra.mrb[0].mxu0 %vm186_vm1, %v179_v17 }
  0x8e   : > { %v184_v18 = vpop.permute.xlu0 %183 }
  0xfa   : > { %v263_v19 = vpop.f32.mrb[0].mxu0 }
  0xfb   : > { %v264_v20 = vadd.f32 %v263_v19, %v184_v18  ;;  %v265_v21 = vpop.f32.mrb[1].mxu0 }
  0xfc   : > { %v266_v22 = vadd.f32 %v265_v21, %v184_v18 }
  0xfd   : > { %v268_v23 = vmax.f32 %v264_v20, 0.0 }
  0xfe   : > { %v269_v24 = vmax.f32 %v266_v22, 0.0 }
  0xff   : > { %270 = vst [vmem:[%s163_s9] sm:$0xff] %v268_v23 }
 0x100   : > { %272 = vst.msk [vmem:[%s163_s9 + $0x8] sm:$0xff] %vm271_vm2, %v269_v24 }
 0x101   : > { %426 = shalt.err (!%p423_p3)
}
 0x102   : > { %s427_s27 = scalar_lea.hbm %s564_s19, 256  ;;  %s431_s30 = scalar_lea.hbm %s609_s3, 512 }
 0x103   : > { %p428_p4 = scmp.ne.s32.totalorder %s564_s19, %s427_s27  ;;  %p432_p9 = scmp.lt.u32.totalorder %s564_s19, %s609_s3 }
 0x104   : > { %p433_p10 = scmp.lt.u32.totalorder %s431_s30, %s427_s27  ;;  %p435_p12 = scmp.lt.u32.totalorder %s427_s27, %s564_s19 }
 0x105   : > { %p429_p7 = pnand %p428_p4, %p538_p5 }
 0x106   : > { %p434_p11 = por %p433_p10, %p432_p9 }
 0x107   : > { %p430_p8 = pneg %p429_p7 }
 0x108   : > { %p436_p13 = por %p435_p12, %p434_p11 }
 0x10a   : > { %p437_p0 = pnand %p436_p13, %p430_p8 }
 0x10c   : > { %440 = shalt.err (!%p437_p0)
}
 0x10d   : > { %371 = dma.vmem_to_hbm [thread:$0]  (%p538_p5), %s566_s10, 256, %s564_s19, %s274_s20  }
 0x10e PF: > { %p377_p1 = scmp.ge.s32.totalorder %s475_s15, 2  ;;  %s300_s6 = sand.u32 1, %s463_s12  }
 0x10f   : > { %s301_s7 = scalar_lea.sflag [#allocation3], %s300_s6 }
 0x110   : > { %p374_p2 = pnand %p377_p1, %p542_p6 }
 0x112   : > { %458 = dma.done.wait (!%p374_p2), %s301_s7, 256  }
 0x113   : > { %460 = vsyncadd (!%p374_p2), %s301_s7, 4294967040  ;;  %p13_p3 = scmp.ge.s32.totalorder %s525_s18, 4   ;;  %s612_s12 = smov %s467_s13 }
 0x114   : > { %s613_s13 = smov %s471_s14  ;;  %s614_s14 = smov %s536_s21 }
 0x115   : > { %s615_s15 = smov %s525_s18  ;;  %15 = sbr.rel (!%p13_p3) target bundleno = 3 (0x3), region = 67 }
 0x11c   :  { %306 = vsyncpa [#allocation3], 1 }
 0x11d   :  { %308 = vsyncpa [#allocation3 + $0x1], 1 }

</bundles_post_ra>
